<compile_context>
chip_gen: v7x
topology: tpu7x:2x2x1
jax: 0.10.0
libtpu: 0.0.40
codegen_flags: <defaults>
</compile_context>

<pallas_src>
import functools

import jax
import jax.numpy as jnp
from jax.experimental import pallas as pl
from jax.experimental.pallas import tpu as pltpu


def gram_matrix_ref(x):
    """Pure-JAX reference of torch `gram_matrix` (f32 accumulation)."""
    a, b, c, d = x.shape
    f = jnp.asarray(x).reshape(a * b, c * d)
    g = jax.lax.dot_general(
        f, f, dimension_numbers=(((1,), (1,)), ((), ())),
        preferred_element_type=jnp.float32)
    return g * (1.0 / (a * b * c * d))


def _round_up(x, n):
    return ((x + n - 1) // n) * n


def _vmem_capacity_bytes():
    """Per-core VMEM capacity, or None if the query is unavailable."""
    try:
        return int(pltpu.get_tpu_info().vmem_capacity_bytes)
    except Exception:
        return None


def _choose_tile_k(m, tm, k, itemsize, budget_bytes, feat_bufs, tgt_bufs):
    """Largest MXU-aligned K tile such that the pipelined feature buffers, the
    f32 Gram accumulator, the target block(s) and the output block fit budget."""
    fixed = (tm * m * 4                 # f32 Gram accumulator scratch
             + tgt_bufs * tm * m * 4    # resident f32 target block(s)
             + 2 * 8 * 128 * 4          # tiny lane-dense output block
             + (1 << 20))               # margin for compiler scratch
    per_k_col = feat_bufs * m * itemsize
    avail = max(budget_bytes - fixed, per_k_col * 128)
    tk = avail // per_k_col
    k128 = _round_up(k, 128)
    if tk >= k128:
        return k128                     # single K step, minimal padding
    if tk >= 256:
        return (tk // 256) * 256        # 256-aligned chunks for the 2x256^2 MXU
    return 128


def _style_loss_kernel(feat_ref, target_ref, out_ref, acc_ref, *,
                       num_row_tiles, tm, inv_gram_norm, inv_mean):
    """feat_ref: (M, TK) K-tile; target_ref: (TM, M) f32 target rows;
    out_ref: (1, 8, 128) per-row-tile partial; acc_ref: (TM, M) f32 scratch."""
    kstep = pl.program_id(1)

    @pl.when(kstep == 0)
    def _init():
        acc_ref[...] = jnp.zeros_like(acc_ref)

    if num_row_tiles == 1:
        lhs = feat_ref[...]
    else:
        row0 = pl.multiple_of(pl.program_id(0) * tm, tm)
        lhs = feat_ref[pl.ds(row0, tm), :]

    # Gram partial sum on the MXU: contract both operands over the last (lane)
    # dim -> trans-B matmul, no transpose materialized. Accumulate in f32.
    # K was padded with zeros in the wrapper, so no masking is needed here.
    acc_ref[...] += jax.lax.dot_general(
        lhs, feat_ref[...],
        dimension_numbers=(((1,), (1,)), ((), ())),
        preferred_element_type=jnp.float32)

    @pl.when(kstep == pl.num_programs(1) - 1)
    def _finalize():
        g = acc_ref[...] * inv_gram_norm
        partial = jnp.sum(jnp.abs(g - target_ref[...])) * inv_mean
        out_ref[...] = jnp.full(out_ref.shape, partial, jnp.float32)


def style_loss(x, target_gram, *, tile_k=None, num_row_tiles=None):
    a, b, c, d = x.shape
    # Keep the native dtype (bf16 halves HBM->VMEM DMA bytes); accumulation
    # inside the kernel is f32 via preferred_element_type.
    feats = jnp.asarray(x).reshape(a * b, c * d)
    m, k = feats.shape
    itemsize = feats.dtype.itemsize

    cap = _vmem_capacity_bytes()
    cap_known = cap is not None
    if not cap_known:
        cap = 64 * 1024 * 1024          # conservative (v7x per-core) fallback
    budget = (cap * 3) // 4             # ~96 MiB on v5e/v6e, ~48 MiB on v7x

    # Row tiling: only worth it where a second TensorCore exists and the
    # kernel is compute-bound (v7x-like, M >= 256); it re-reads the feature
    # stream once per row tile, which hurts the mem-bound regime on v5e/v6e.
    if num_row_tiles is None:
        num_row_tiles = 2 if (cap_known and cap <= 64 * 1024 * 1024
                              and m >= 256 and m % 256 == 0) else 1
    num_row_tiles = max(int(num_row_tiles), 1)
    if num_row_tiles > 1 and (m % num_row_tiles != 0
                              or (m // num_row_tiles) % 8 != 0):
        num_row_tiles = 1
    tm = m // num_row_tiles
    # Constant target block -> single buffer; row-tiled target -> double-buffer
    # so the next row tile's target DMA hides behind the current K loop.
    tgt_bufs = 1 if num_row_tiles == 1 else 2

    feat_bufs = 2
    if tile_k is not None:
        tk = max(_round_up(int(tile_k), 128), 128)
    else:
        tk = _choose_tile_k(m, tm, k, itemsize, budget, feat_bufs, tgt_bufs)
        if pl.cdiv(k, tk) >= 8:
            feat_bufs = 3               # deeper pipeline for long HBM streams
            tk = _choose_tile_k(m, tm, k, itemsize, budget, feat_bufs, tgt_bufs)

    # Pad K once in the wrapper (zeros don't change the Gram sum) so no
    # per-step masking runs in the kernel.
    k_pad = pl.cdiv(k, tk) * tk
    if k_pad != k:
        feats = jnp.pad(feats, ((0, 0), (0, k_pad - k)))
    num_k_tiles = k_pad // tk

    usage = (feat_bufs * m * tk * itemsize
             + (1 + tgt_bufs) * tm * m * 4
             + 2 * 8 * 128 * 4)
    vmem_limit = min(cap - (4 << 20), max(budget, usage + (2 << 20)))

    kernel = functools.partial(
        _style_loss_kernel,
        num_row_tiles=num_row_tiles, tm=tm,
        inv_gram_norm=1.0 / (a * b * c * d),   # uses the ORIGINAL (unpadded) K
        inv_mean=1.0 / (m * m))

    cost = pl.CostEstimate(
        flops=2 * m * m * k_pad,
        transcendentals=0,
        bytes_accessed=(num_row_tiles * m * k_pad * itemsize
                        + m * m * 4 + num_row_tiles * 8 * 128 * 4))

    feat_spec = pl.BlockSpec((m, tk), lambda i, kk: (0, kk),
                             pipeline_mode=pl.Buffered(feat_bufs))
    tgt_spec = pl.BlockSpec((tm, m), lambda i, kk: (i, 0),
                            pipeline_mode=pl.Buffered(tgt_bufs))

    out = pl.pallas_call(
        kernel,
        out_shape=jax.ShapeDtypeStruct((num_row_tiles, 8, 128), jnp.float32),
        grid=(num_row_tiles, num_k_tiles),
        in_specs=[feat_spec, tgt_spec],
        out_specs=pl.BlockSpec((1, 8, 128), lambda i, kk: (i, 0, 0)),
        scratch_shapes=[pltpu.VMEM((tm, m), jnp.float32)],  # Gram accumulator
        compiler_params=pltpu.CompilerParams(
            dimension_semantics=("parallel", "arbitrary"),  # rows || / K reduce
            vmem_limit_bytes=int(vmem_limit)),
        cost_estimate=cost,
    )(feats, target_gram)

    # Per-row-tile partial L1 sums (already scaled by 1/(M*M)) -> final mean.
    return jnp.sum(out[:, 0, 0])


class StyleLoss:
    """JAX/Pallas port of the PyTorch StyleLoss module (L1 on Gram matrices)."""

    def __init__(self, target_feature, *, tile_k=None, num_row_tiles=None):
        # Target Gram built from the target features in their native dtype
        # (same precision path as the kernel), f32 accumulation, f32 result.
        self.target = gram_matrix_ref(jnp.asarray(target_feature))  # (M, M) f32
        self.tile_k = tile_k
        self.num_row_tiles = num_row_tiles

    def __call__(self, x):
        return style_loss(x, self.target, tile_k=self.tile_k,
                          num_row_tiles=self.num_row_tiles)


if __name__ == "__main__":
    key = jax.random.PRNGKey(0)
    k_tgt, k_in, k_tgt2, k_in2 = jax.random.split(key, 4)

    # Conv-feature-map-like shapes: (batch=2, channels=4, 16x16) -> M=8, K=256.
    # bf16 features: native MXU dtype, halves HBM->VMEM traffic (accum is f32).
    target_feature = jax.random.normal(
        k_tgt, (2, 4, 16, 16), jnp.float32).astype(jnp.bfloat16)
    x = jax.random.normal(k_in, (2, 4, 16, 16), jnp.float32).astype(jnp.bfloat16)

    # tile_k=128 -> 2-step K reduction: exercises the pipelined accumulate path.
    module = StyleLoss(target_feature, tile_k=128)
    loss = jax.block_until_ready(module(x))

    # Auto tile selection (single full-K step at this toy size).
    loss_auto = jax.block_until_ready(StyleLoss(target_feature)(x))

    ref = jnp.mean(jnp.abs(gram_matrix_ref(x) - module.target))
    assert jnp.allclose(loss, ref, atol=1e-5, rtol=1e-4), (loss, ref)
    assert jnp.allclose(loss_auto, ref, atol=1e-5, rtol=1e-4), (loss_auto, ref)

    # Larger M exercises the row-tiled ("parallel" axis) path used for the
    # v7x two-TensorCore split: M=256, two row tiles, two K steps.
    target_feature2 = jax.random.normal(
        k_tgt2, (1, 256, 16, 16), jnp.float32).astype(jnp.bfloat16)
    x2 = jax.random.normal(k_in2, (1, 256, 16, 16), jnp.float32).astype(jnp.bfloat16)
    module2 = StyleLoss(target_feature2, tile_k=128, num_row_tiles=2)
    loss2 = jax.block_until_ready(module2(x2))
    ref2 = jnp.mean(jnp.abs(gram_matrix_ref(x2) - module2.target))
    assert jnp.allclose(loss2, ref2, atol=1e-5, rtol=1e-4), (loss2, ref2)

    print("KERNEL_OK")
</pallas_src>

<mosaic_0001>
module attributes {stable_mosaic.version = 11 : i64} {
  func.func @_style_loss_kernel(%arg0: i32, %arg1: i32, %arg2: memref<8x128xbf16, #tpu.memory_space<vmem>>, %arg3: memref<8x8xf32, #tpu.memory_space<vmem>>, %arg4: memref<1x8x128xf32, #tpu.memory_space<vmem>>, %arg5: memref<8x8xf32, #tpu.memory_space<vmem>>) attributes {dimension_semantics = [#tpu.dimension_semantics<parallel>, #tpu.dimension_semantics<arbitrary>], iteration_bounds = array<i64: 1, 2>, scalar_prefetch = 0 : i64, scratch_operands = 1 : i64, tpu.core_type = #tpu.core_type<tc>, window_params = [{pipeline_mode = #tpu.pipeline_mode<double_buffered>, transform_indices = @transform_0, window_bounds = array<i64: 8, 128>}, {pipeline_mode = #tpu.pipeline_mode<synchronous>, transform_indices = @transform_1, window_bounds = array<i64: 8, 8>}, {transform_indices = @transform_2, window_bounds = array<i64: 1, 8, 128>}]} {
    %c0_i32 = arith.constant 0 : i32
    %0 = arith.cmpi eq, %arg1, %c0_i32 : i32
    %1 = arith.extui %0 : i1 to i32
    %c0_i32_0 = arith.constant 0 : i32
    %2 = arith.cmpi ne, %1, %c0_i32_0 : i32
    scf.if %2 {
      %cst_9 = arith.constant 0.000000e+00 : f32
      %12 = vector.broadcast %cst_9 : f32 to vector<8x8xf32>
      %c0_10 = arith.constant 0 : index
      %c0_11 = arith.constant 0 : index
      %13 = vector.load %arg5[%c0_10, %c0_11] : memref<8x8xf32, #tpu.memory_space<vmem>>, vector<8x8xf32>
      tpu.vector_store %arg5[%c0_10, %c0_11], %12 {strides = array<i32>} : memref<8x8xf32, #tpu.memory_space<vmem>>, vector<8x8xf32>,
    } else {
    }
    %c0 = arith.constant 0 : index
    %c0_1 = arith.constant 0 : index
    %3 = vector.load %arg2[%c0, %c0_1] : memref<8x128xbf16, #tpu.memory_space<vmem>>, vector<8x128xbf16>
    %c0_2 = arith.constant 0 : index
    %c0_3 = arith.constant 0 : index
    %4 = vector.load %arg5[%c0_2, %c0_3] : memref<8x8xf32, #tpu.memory_space<vmem>>, vector<8x8xf32>
    %c0_4 = arith.constant 0 : index
    %c0_5 = arith.constant 0 : index
    %5 = vector.load %arg2[%c0_4, %c0_5] : memref<8x128xbf16, #tpu.memory_space<vmem>>, vector<8x128xbf16>
    %cst = arith.constant dense<0.000000e+00> : vector<8x8xf32>
    %6 = tpu.matmul %3, %5, %cst {dimension_numbers = #tpu.dot_dimension_numbers<[1], [1], [0], [0], [0, 0, 1, 0], [], []>} : vector<8x128xbf16>, vector<8x128xbf16>, vector<8x8xf32> -> vector<8x8xf32>
    %7 = arith.addf %4, %6 : vector<8x8xf32>
    %c0_6 = arith.constant 0 : index
    %c0_7 = arith.constant 0 : index
    %8 = vector.load %arg5[%c0_6, %c0_7] : memref<8x8xf32, #tpu.memory_space<vmem>>, vector<8x8xf32>
    tpu.vector_store %arg5[%c0_6, %c0_7], %7 {strides = array<i32>} : memref<8x8xf32, #tpu.memory_space<vmem>>, vector<8x8xf32>,
    %c1_i32 = arith.constant 1 : i32
    %9 = arith.cmpi eq, %arg1, %c1_i32 : i32
    %10 = arith.extui %9 : i1 to i32
    %c0_i32_8 = arith.constant 0 : i32
    %11 = arith.cmpi ne, %10, %c0_i32_8 : i32
    scf.if %11 {
      %c0_9 = arith.constant 0 : index
      %c0_10 = arith.constant 0 : index
      %12 = vector.load %arg5[%c0_9, %c0_10] : memref<8x8xf32, #tpu.memory_space<vmem>>, vector<8x8xf32>
      %cst_11 = arith.constant 4.8828125E-4 : f32
      %13 = vector.broadcast %cst_11 : f32 to vector<8x8xf32>
      %14 = arith.mulf %12, %13 : vector<8x8xf32>
      %c0_12 = arith.constant 0 : index
      %c0_13 = arith.constant 0 : index
      %15 = vector.load %arg3[%c0_12, %c0_13] : memref<8x8xf32, #tpu.memory_space<vmem>>, vector<8x8xf32>
      %16 = arith.subf %14, %15 : vector<8x8xf32>
      %17 = math.absf %16 : vector<8x8xf32>
      %18 = vector.shape_cast %17 : vector<8x8xf32> to vector<1x8x8xf32>
      %cst_14 = arith.constant dense<0.000000e+00> : vector<1xf32>
      %19 = vector.multi_reduction <add>, %18, %cst_14 [1, 2] : vector<1x8x8xf32> to vector<1xf32>
      %20 = vector.shape_cast %19 : vector<1xf32> to vector<1x1x1xf32>
      %21 = vector.extract %20[0, 0, 0] : f32 from vector<1x1x1xf32>
      %cst_15 = arith.constant 1.562500e-02 : f32
      %22 = arith.mulf %21, %cst_15 : f32
      %23 = vector.broadcast %22 : f32 to vector<1x8x128xf32>
      %c0_16 = arith.constant 0 : index
      %c0_17 = arith.constant 0 : index
      %c0_18 = arith.constant 0 : index
      %24 = vector.load %arg4[%c0_16, %c0_17, %c0_18] : memref<1x8x128xf32, #tpu.memory_space<vmem>>, vector<1x8x128xf32>
      tpu.vector_store %arg4[%c0_16, %c0_17, %c0_18], %23 {strides = array<i32>} : memref<1x8x128xf32, #tpu.memory_space<vmem>>, vector<1x8x128xf32>,
    } else {
    }
    return
  }
  func.func @transform_0(%arg0: i32, %arg1: i32) -> (i32, i32) {
    %c0_i32 = arith.constant 0 : i32
    %c0_i32_0 = arith.constant 0 : i32
    return %c0_i32, %arg1 : i32, i32
  }
  func.func @transform_1(%arg0: i32, %arg1: i32) -> (i32, i32) {
    %c0_i32 = arith.constant 0 : i32
    %c0_i32_0 = arith.constant 0 : i32
    return %arg0, %c0_i32 : i32, i32
  }
  func.func @transform_2(%arg0: i32, %arg1: i32) -> (i32, i32, i32) {
    %c0_i32 = arith.constant 0 : i32
    %c0_i32_0 = arith.constant 0 : i32
    %c0_i32_1 = arith.constant 0 : i32
    return %arg0, %c0_i32, %c0_i32_0 : i32, i32, i32
  }
}

</mosaic_0001>

<bundles_post_ra>
// kernel: tpu_custom_call.1
= control target key start
LH: loop header
LB: loop body
LE: loop exit
PB: predicated region body
PF: predicated region fallthrough
CT: control target
= control target key end

     0   :  { %7 = vsyncpa [#allocation4], 0  ;;  %s796_s0 = inlined_call_operand.hbm [shape: bf16[8,256], index: 0, kind: input, shape index: {}]   ;;  %s797_s1 = inlined_call_operand.hbm [shape: f32[8,8], index: 1, kind: input, shape index: {}]   ;;  %s798_s2 = inlined_call_operand.hbm [shape: f32[1,8,128], index: 2, kind: output, shape index: {}]  }
   0x1   :  { %9 = vsyncpa [#allocation4 + $0x1], 0 }
   0x2   :  { %10 = vsyncpa [#allocation7], 0 }
   0x3   :  { %11 = vsyncpa [#allocation5], 0  ;;  %s606_s9 = smov 0   ;;  %s608_s10 = smov 0  }
   0x4   :  { %s610_s11 = smov 0   ;;  %s612_s12 = smov 0  }
   0x5   :  { %s614_s13 = smov 0   ;;  %s616_s14 = smov 0  }
   0x6 LB: > { %s340_s15 = sadd.s32 4294967295, %s583_s14   ;;  %p49_p0 = scmp.ne.s32.totalorder %s567_s10, %s563_s9  ;;  %s583_s14 = sphi %s616_s14, %s17_s14   ;;  %s579_s13 = sphi %s614_s13, %s818_s13   ;;  %s575_s12 = sphi %s612_s12, %s817_s12   ;;  %s571_s11 = sphi %s610_s11, %s816_s11   ;;  %s567_s10 = sphi %s608_s10, %s815_s10   ;;  %s563_s9 = sphi %s606_s9, %s814_s9  }
   0x7   : > { %p638_p1 = scmp.eq.s32.totalorder %s340_s15, 0  ;;  %p341_p2 = scmp.ge.s32.totalorder %s583_s14, 1 }
   0x8   : > { %p112_p3 = scmp.lt.s32.totalorder %s583_s14, 3  ;;  %s585_s19 = smov [#allocation6]  }
   0x9   : > { %s803_s16 = scalar_select %p638_p1, 1, 0 }
   0xa   : > { %p646_p4 = por %p638_p1, %p49_p0  ;;  %p650_p5 = pnand %p341_p2, %p112_p3 }
   0xb   : > { %s127_s20 = sshll.u32 %s585_s19, 4  ;;  %s26_s22 = sadd.s32 1, %s579_s13  ;;  %s128_s20 = int_to_ptr.vmem [resolvable:$true] %s127_s20 }
   0xc   : > { %s804_s17 = scalar_select %p646_p4, 1, 0 }
   0xd   : > { %s805_s18 = scalar_select %p650_p5, 1, 0 }
   0xe   : > { %p375_p6 = pneg %p650_p5  ;;  %s36_s23 = sadd.s32 1, %s571_s11 }
   0xf   : > { %p664_p8 = scmp.ge.s32.totalorder %s26_s22, 2  ;;  %s441_s27 = scalar_lea.hbm %s797_s1, 128 }
  0x10   : > { %p658_p7 = pnand %p375_p6, %p638_p1  ;;  %p442_p9 = scmp.ne.s32.totalorder %s797_s1, %s441_s27 }
  0x11   : > { %s807_s24 = scalar_select %p664_p8, 1, 0 }
  0x12   : > { %p443_p10 = pneg %p658_p7  ;;  %p448_p13 = scmp.lt.u32.totalorder %s441_s27, %s797_s1 }
  0x14   : > { %p444_p11 = pnand %p443_p10, %p442_p9 }
  0x16   : > { %p445_p12 = pneg %p444_p11 }
  0x18   : > { %p450_p0 = pnand %p448_p13, %p445_p12 }
  0x1a   : > { %453 = shalt.err (!%p450_p0)
}
  0x1b   : > { %s454_s4 = scalar_lea.vmem %s128_s20, 128  ;;  %p462_p1 = scmp.lt.s32.totalorder %s128_s20, %s128_s20 }
  0x1c   : > { %p455_p2 = scmp.ne.s32.totalorder %s128_s20, %s454_s4  ;;  %p463_p4 = scmp.lt.s32.totalorder %s454_s4, %s454_s4 }
  0x1e   : > { %p457_p3 = pnand %p455_p2, %p443_p10  ;;  %p464_p5 = por %p463_p4, %p462_p1 }
  0x20   : > { %p458_p6 = pneg %p457_p3 }
  0x22   : > { %p465_p8 = pnand %p464_p5, %p458_p6 }
  0x24   : > { %468 = shalt.err (!%p465_p8)
}
  0x25   : > { %378 = dma.hbm_to_vmem [thread:$0]  (!%p658_p7), %s797_s1, 128, %s128_s20, [#allocation7]  }
  0x26   : > { %p808_p9 = scmp.ne.s32.totalorder %s807_s24, 0  ;;  %p43_p1 = scmp.ne.s32.totalorder %s571_s11, %s567_s10 }
  0x27   : > { %p44_p4 = scmp.eq.s32.totalorder %s583_s14, 0  ;;  %p384_p5 = scmp.lt.s32.totalorder %s583_s14, 2 }
  0x28   : > { %s820_s22 = smov (%p808_p9, %s26_s22), 0  ;;  %s138_s8 = sand.u32 1, %s571_s11  }
  0x29   : > { %s33_s7 = ssub.s32 %s579_s13, %s820_s22  ;;  %p45_p10 = por %p44_p4, %p43_p1 }
  0x2a   : > { %p34_p8 = scmp.eq.s32.totalorder %s33_s7, 0  ;;  %s345_s9 = sshll.u32 %s579_s13, 6 }
  0x2b   : > { %s344_s21 = sshll.u32 %s138_s8, 2  ;;  %s704_s20 = scalar_lea.hbm %s796_s0, %s345_s9 }
  0x2c   : > { %s699_s19 = scalar_select %p34_p8, %s571_s11, %s36_s23  }
  0x2d   : > { %s142_s24 = scalar_lea.vmem [#allocation3], %s344_s21  ;;  %p706_p7 = pnand %p384_p5, %p45_p10 }
  0x2e   : > { %s149_s27 = sshll.u32 %s142_s24, 4  ;;  %s139_s23 = scalar_lea.sflag [#allocation4], %s138_s8  ;;  %s710_s27 = int_to_ptr.vmem [resolvable:$true] %s149_s27 }
  0x2f   : > { %s469_s29 = scalar_lea.hbm %s704_s20, 64  ;;  %p471_p12 = pneg %p706_p7 }
  0x30   : > { %p470_p11 = scmp.ne.s32.totalorder %s704_s20, %s469_s29  ;;  %s474_s4 = scalar_lea.hbm %s796_s0, 128 }
  0x31   : > { %p475_p2 = scmp.lt.u32.totalorder %s704_s20, %s796_s0  ;;  %p476_p3 = scmp.lt.u32.totalorder %s474_s4, %s469_s29 }
  0x32   : > { %p472_p13 = pnand %p471_p12, %p470_p11  ;;  %p478_p9 = scmp.lt.u32.totalorder %s469_s29, %s704_s20 }
  0x33   : > { %p477_p6 = por %p476_p3, %p475_p2 }
  0x34   : > { %p473_p0 = pneg %p472_p13 }
  0x35   : > { %p479_p1 = por %p478_p9, %p477_p6 }
  0x37   : > { %p480_p4 = pnand %p479_p1, %p473_p0 }
  0x39   : > { %483 = shalt.err (!%p480_p4)
}
  0x3a   : > { %s484_s7 = scalar_lea.vmem %s710_s27, 64  ;;  %s586_s8 = smov [#allocation3]  }
  0x3b   : > { %p485_p5 = scmp.ne.s32.totalorder %s710_s27, %s484_s7  ;;  %s489_s9 = sshll.u32 %s586_s8, 4  ;;  %s490_s9 = int_to_ptr.vmem [resolvable:$false] %s489_s9 }
  0x3c   : > { %s491_s21 = scalar_lea.vmem %s490_s9, 128  ;;  %p492_p11 = scmp.lt.s32.totalorder %s710_s27, %s490_s9 }
  0x3d   : > { %p487_p8 = pnand %p485_p5, %p471_p12  ;;  %p493_p13 = scmp.lt.s32.totalorder %s491_s21, %s484_s7 }
  0x3f   : > { %p488_p10 = pneg %p487_p8  ;;  %p494_p2 = por %p493_p13, %p492_p11 }
  0x41   : > { %p495_p3 = pnand %p494_p2, %p488_p10 }
  0x43   : > { %498 = shalt.err (!%p495_p3)
}
  0x44   : > { %382 = dma.hbm_to_vmem [thread:$0]  (!%p706_p7), %s704_s20, 64, %s710_s27, %s139_s23  }
  0x45   : > { %p810_p0 = scmp.ne.s32.totalorder %s805_s18, 0 }
  0x46   : > { %s160_s25 = sand.u32 (!%p810_p0), 1, %s567_s10   ;;  %p811_p12 = scmp.ne.s32.totalorder (!%p810_p0), %s804_s17, 0 }
  0x47   : > { %158 = sbr.rel (%p810_p0) target bundleno = 562 (0x232), region = 28  ;;  %s347_s26 = sshll.u32 (!%p810_p0), %s160_s25, 2 }
  0x48   : > { %s161_s24 = scalar_lea.sflag (!%p810_p0), [#allocation4], %s160_s25  ;;  %s164_s29 = scalar_lea.vmem (!%p810_p0), [#allocation3], %s347_s26 }
  0x4e   : > { %550 = dma.done.wait (%p811_p12), %s161_s24, 64  }
  0x4f   : > { %552 = vsyncadd (%p811_p12), %s161_s24, 4294967232  ;;  %p812_p6 = scmp.ne.s32.totalorder %s803_s16, 0 }
  0x51   : > { %554 = dma.done.wait (%p812_p6), [#allocation7], 128  }
  0x52   : > { %556 = vsyncadd (%p812_p6), [#allocation7], 4294967168  ;;  %p349_p7 = scmp.ne.s32.totalorder %s575_s12, 0 }
  0x53   : > { %vm189_vm0 = vcmask (!%p349_p7), 64512   ;;  %v587_v0 = vmov (!%p349_p7), 0.0  }
  0x54   : > { %188 = sbr.rel (%p349_p7) target bundleno = 91 (0x5b), region = 40  ;;  %190 = vst.msk [vmem:[#allocation2] sm:$0xff] (!%p349_p7), %vm189_vm0, %v587_v0 }
  0x5b PF: > { %v191_v1 = vld [vmem:[%s164_s29] sm:$0xf]  ;;  %v588_v2 = vmov 0.0   ;;  %vm589_vm1 = vmmov 0   ;;  %v192_v3 = vld [vmem:[#allocation2] sm:$0xff]  ;;  %vm234_vm2 = vcmask 64512  }
  0x5c   : > { %357 = vmatprep.subr.bf16.mxu0 %v588_v2  ;;  %359 = vmatprep.mubr.msk.bf16.mxu0 %vm589_vm1, %v588_v2  ;;  %p350_p9 = scmp.ne.s32.totalorder %s575_s12, 1 }
  0x5d   : > { %358 = vmatpush3.bf16.xpose.msra.mxu0 %v191_v1  ;;  %v242_v10 = vld [vmem:[#allocation6] sm:$0xff] (!%p350_p9) }
  0x64   : > { %360 = vmatmul.mubr.bf16.vlgmr.msra.gmra.mrb[0].mxu0 %v191_v1 }
 0x134   : > { %239 = sbr.rel (%p350_p9) target bundleno = 537 (0x219), region = 44 }
 0x137   : > { %v227_v4 = vpop.f32.mrb[0].mxu0 }
 0x138   : > { %v233_v5 = vadd.f32 %v227_v4, %v192_v3  ;;  %v361_v6 = vpop.f32.mrb[1].mxu0 }
 0x139   : > { %v230_v7 = vpop.f32.mrb[2].mxu0 }
 0x13a   : > { %235 = vst.msk [vmem:[#allocation2] sm:$0xff] %vm234_vm2, %v233_v5  ;;  %v362_v8 = vpop.f32.mrb[3].mxu0 }
 0x141   : > { %v240_v9 = vld [vmem:[#allocation2] sm:$0xff] }
 0x142   : > { %v241_v11 = vmul.f32 0.00048828125, %v240_v9 }
 0x144   : > { %v243_v12 = vsub.f32 %v241_v11, %v242_v10 }
 0x146   : > { %v244_v13 = vand.u32 2147483647, %v243_v12 }
 0x148   : > { %v245_v14 = vsel %vm234_vm2, %v244_v13, 0.0 }
 0x149   : > { %246 = vadd.xlane.f32.xlu0 %v245_v14 }
 0x1d6   : > { %v247_v15 = vpop.xlane.xlu0 %246 }
 0x1d7   : > { %v248_v16 = vrot.slane %v247_v15, 4 }
 0x1d9   : > { %v249_v17 = vadd.f32 %v248_v16, %v247_v15 }
 0x1db   : > { %v250_v18 = vrot.slane %v249_v17, 2 }
 0x1dd   : > { %v251_v19 = vadd.f32 %v250_v18, %v249_v17 }
 0x1df   : > { %v252_v20 = vrot.slane %v251_v19, 1 }
 0x1e1   : > { %v253_v21 = vadd.f32 %v252_v20, %v251_v19 }
 0x1e3   : > { %363 = vpush %v253_v21 }
 0x214   : > { %s364_s16 = spop %363 }
 0x215   : > { %s255_s17 = smul.f32 0.015625, %s364_s16 }
 0x217   : > { %v256_v22 = vstv %s255_s17 }
 0x218   : > { %257 = vst [vmem:[#allocation8] sm:$0xff] %v256_v22 }
 0x219 PF: > { %p752_p1 = scmp.eq.s32.totalorder %s340_s15, 1  ;;  %s590_s18 = smov [#allocation8]  }
 0x21a   : > { %s267_s20 = sshll.u32 %s590_s18, 4  ;;  %s268_s20 = int_to_ptr.vmem [resolvable:$true] %s267_s20 }
 0x21b   : > { %s499_s27 = scalar_lea.vmem %s268_s20, 128  ;;  %p506_p10 = scmp.lt.s32.totalorder %s268_s20, %s268_s20 }
 0x21c   : > { %p500_p4 = scmp.ne.s32.totalorder %s268_s20, %s499_s27  ;;  %p507_p11 = scmp.lt.s32.totalorder %s499_s27, %s499_s27 }
 0x21e   : > { %p501_p5 = pnand %p500_p4, %p752_p1  ;;  %p508_p13 = por %p507_p11, %p506_p10 }
 0x220   : > { %p502_p8 = pneg %p501_p5 }
 0x222   : > { %p509_p2 = pnand %p508_p13, %p502_p8 }
 0x224   : > { %512 = shalt.err (!%p509_p2)
}
 0x225   : > { %s513_s15 = scalar_lea.hbm %s798_s2, 128 }
 0x226   : > { %p514_p3 = scmp.ne.s32.totalorder %s798_s2, %s513_s15  ;;  %p519_p6 = scmp.lt.u32.totalorder %s513_s15, %s798_s2 }
 0x228   : > { %p515_p0 = pnand %p514_p3, %p752_p1 }
 0x22a   : > { %p516_p12 = pneg %p515_p0 }
 0x22c   : > { %p521_p7 = pnand %p519_p6, %p516_p12 }
 0x22e   : > { %524 = shalt.err (!%p521_p7)
}
 0x22f   : > { %372 = dma.vmem_to_hbm [thread:$0]  (%p752_p1), %s268_s20, 128, %s798_s2, [#allocation5]  }
 0x230   : > { %558 = dma.done.wait (%p752_p1), [#allocation5], 128  }
 0x231   : > { %560 = vsyncadd (%p752_p1), [#allocation5], 4294967168 }
 0x232 PF: > { %s17_s14 = sadd.s32 1, %s583_s14   ;;  %s814_s9 = smov %s567_s10 }
 0x233   : > { %p14_p9 = scmp.ge.s32.totalorder %s17_s14, 4   ;;  %s815_s10 = smov %s571_s11 }
 0x234   : > { %s816_s11 = smov %s699_s19  ;;  %s817_s12 = smov %s579_s13 }
 0x235   : > { %s818_s13 = smov %s820_s22  ;;  %16 = sbr.rel (!%p14_p9) target bundleno = 6 (0x6), region = 79 }
 0x23c   :  { %280 = vsyncpa [#allocation4], 1 }
 0x23d   :  { %282 = vsyncpa [#allocation4 + $0x1], 1 }
 0x23e   :  { %283 = vsyncpa [#allocation7], 1 }
 0x23f   :  { %284 = vsyncpa [#allocation5], 1 }
 0x240   :  { %286 = vsyncpa [#allocation5 + $0x1], 1 }

</bundles_post_ra>
